<compile_context>
chip_gen: v6e
topology: v6e:2x2x1
jax: 0.10.0
libtpu: 0.0.40
codegen_flags: <defaults>
</compile_context>

<pallas_src>
import jax
import jax.numpy as jnp
from jax.experimental import pallas as pl
from jax.experimental.pallas import tpu as pltpu

SEQ = 10
D_MODEL = 32
IN_FEATURES = SEQ * D_MODEL          # 320
OUTPUTS_DIM = 2                      # CartPole-v0 action_space.n

BATCH_TILE = 1024                    # ~1.25 MB x-tile: good DMA size, tiny VMEM


def rlnet_kernel(x_ref, w1_ref, b1_ref, w2_ref, b2_ref, out_ref):
    """Fused Linear(320->32) + ReLU + Linear(32->outputs_dim) on one batch tile.

    x_ref  : (SEQ, tb, D_MODEL)   seq-first activations, native layout (no transpose)
    w1_ref : (SEQ, D_MODEL, D_MODEL)  first-layer weight, reshaped per-seq-slot
    b1_ref : (1, D_MODEL)
    w2_ref : (D_MODEL, OUTPUTS_DIM)
    b2_ref : (1, OUTPUTS_DIM)
    out_ref: (tb, OUTPUTS_DIM)
    """
    tb = x_ref.shape[1]
    # Layer 1: contract over (seq, d) as SEQ small MXU pushes (mem-bound kernel,
    # the extra pushes are free) accumulated in f32.
    acc = jnp.zeros((tb, D_MODEL), jnp.float32)
    for s in range(SEQ):                                   # static unroll
        acc = acc + jnp.dot(x_ref[s], w1_ref[s],
                            preferred_element_type=jnp.float32)
    h = jnp.maximum(acc + b1_ref[...], 0.0)                # bias + ReLU (VPU, f32)
    # Layer 2: (tb,32) @ (32,2) — narrow output kept narrow (minimal writeback).
    out = jnp.dot(h, w2_ref[...], preferred_element_type=jnp.float32) + b2_ref[...]
    out_ref[...] = out.astype(out_ref.dtype)


def _pick_batch_tile(batch):
    # Small/medium batch: one block (tiny VMEM footprint, latency regime).
    # Large batch: fixed 1024-row tile, unconditional cdiv tiling — Pallas masks
    # the ragged last tile, so any B works without VMEM blow-up.
    return batch if batch <= BATCH_TILE else BATCH_TILE


@jax.jit
def rlnet_forward(extract, params):
    """extract: (SEQ, B, D_MODEL), seq-first — matches the PyTorch module input."""
    S, B, D = extract.shape
    assert S == SEQ and D == D_MODEL, "RlNet expects (10, B, 32) features"

    # Weight plumbing only (tiny, one-off): w1 (320, 32) -> (SEQ, 32, 32) so the
    # kernel can contract directly over (seq, d) without the activation transpose.
    w1_3d = params["w1"].reshape(SEQ, D_MODEL, D_MODEL)
    b1 = params["b1"].reshape(1, D_MODEL)                  # lane-aligned bias
    w2 = params["w2"]                                      # (32, OUTPUTS_DIM)
    b2 = params["b2"].reshape(1, OUTPUTS_DIM)

    tb = _pick_batch_tile(B)
    grid = (pl.cdiv(B, tb),)

    rep3 = lambda shape: pl.BlockSpec(shape, lambda i: (0, 0, 0))
    rep2 = lambda shape: pl.BlockSpec(shape, lambda i: (0, 0))

    return pl.pallas_call(
        rlnet_kernel,
        out_shape=jax.ShapeDtypeStruct((B, OUTPUTS_DIM), jnp.float32),
        grid=grid,
        in_specs=[
            # Native seq-first layout, batch-tiled along the middle axis.
            pl.BlockSpec((SEQ, tb, D_MODEL), lambda i: (0, i, 0)),
            rep3(w1_3d.shape),
            rep2(b1.shape),
            rep2(w2.shape),
            rep2(b2.shape),
        ],
        out_specs=pl.BlockSpec((tb, OUTPUTS_DIM), lambda i: (i, 0)),
        compiler_params=pltpu.CompilerParams(
            dimension_semantics=("parallel",)),  # batch tiles shard across v7x TCs
    )(extract, w1_3d, b1, w2, b2)


def init_params(key):
    """Deterministic init matching the PyTorch Linear shapes (stored as (in, out))."""
    k1, k2, k3, k4 = jax.random.split(key, 4)

    def lin(kw, kb, fan_in, fan_out):
        bound = 1.0 / (fan_in ** 0.5)
        w = jax.random.uniform(kw, (fan_in, fan_out), jnp.float32, -bound, bound)
        b = jax.random.uniform(kb, (fan_out,), jnp.float32, -bound, bound)
        return w, b

    w1, b1 = lin(k1, k2, IN_FEATURES, D_MODEL)      # Linear(10*32, 32)
    w2, b2 = lin(k3, k4, D_MODEL, OUTPUTS_DIM)      # Linear(32, outputs_dim)
    return dict(w1=w1, b1=b1, w2=w2, b2=b2)


if __name__ == "__main__":
    key = jax.random.PRNGKey(0)
    k_params, k_x = jax.random.split(key)

    params = init_params(k_params)

    BATCH = 2
    extract = jax.random.normal(k_x, (SEQ, BATCH, D_MODEL), dtype=jnp.float32)

    out = rlnet_forward(extract, params)
    out = jax.block_until_ready(out)

    # Pure-JAX reference of the exact PyTorch forward: transpose -> reshape -> MLP.
    ref = jnp.maximum(
        jnp.transpose(extract, (1, 0, 2)).reshape(BATCH, -1) @ params["w1"]
        + params["b1"], 0.0
    ) @ params["w2"] + params["b2"]

    assert out.shape == (BATCH, OUTPUTS_DIM)
    assert jnp.all(jnp.isfinite(out))
    assert jnp.allclose(out, ref, atol=1e-4, rtol=1e-4)
    print("KERNEL_OK")
</pallas_src>

<mosaic_0001>
module attributes {stable_mosaic.version = 11 : i64} {
  func.func @rlnet_kernel(%arg0: i32, %arg1: memref<10x2x32xf32, #tpu.memory_space<vmem>>, %arg2: memref<10x32x32xf32, #tpu.memory_space<vmem>>, %arg3: memref<1x32xf32, #tpu.memory_space<vmem>>, %arg4: memref<32x2xf32, #tpu.memory_space<vmem>>, %arg5: memref<1x2xf32, #tpu.memory_space<vmem>>, %arg6: memref<2x2xf32, #tpu.memory_space<vmem>>) attributes {dimension_semantics = [#tpu.dimension_semantics<parallel>], iteration_bounds = array<i64: 1>, scalar_prefetch = 0 : i64, scratch_operands = 0 : i64, tpu.core_type = #tpu.core_type<tc>, window_params = [{transform_indices = @transform_0, window_bounds = array<i64: 10, 2, 32>}, {pipeline_mode = #tpu.pipeline_mode<synchronous>, transform_indices = @transform_1, window_bounds = array<i64: 10, 32, 32>}, {pipeline_mode = #tpu.pipeline_mode<synchronous>, transform_indices = @transform_2, window_bounds = array<i64: 1, 32>}, {pipeline_mode = #tpu.pipeline_mode<synchronous>, transform_indices = @transform_3, window_bounds = array<i64: 32, 2>}, {pipeline_mode = #tpu.pipeline_mode<synchronous>, transform_indices = @transform_4, window_bounds = array<i64: 1, 2>}, {transform_indices = @transform_5, window_bounds = array<i64: 2, 2>}]} {
    %cst = arith.constant 0.000000e+00 : f32
    %0 = vector.broadcast %cst : f32 to vector<2x32xf32>
    %c0 = arith.constant 0 : index
    %c0_0 = arith.constant 0 : index
    %c0_1 = arith.constant 0 : index
    %1 = vector.load %arg1[%c0, %c0_0, %c0_1] : memref<10x2x32xf32, #tpu.memory_space<vmem>>, vector<1x2x32xf32>
    %2 = vector.shape_cast %1 : vector<1x2x32xf32> to vector<2x32xf32>
    %c0_2 = arith.constant 0 : index
    %c0_3 = arith.constant 0 : index
    %c0_4 = arith.constant 0 : index
    %3 = vector.load %arg2[%c0_2, %c0_3, %c0_4] : memref<10x32x32xf32, #tpu.memory_space<vmem>>, vector<1x32x32xf32>
    %4 = vector.shape_cast %3 : vector<1x32x32xf32> to vector<32x32xf32>
    %cst_5 = arith.constant dense<0.000000e+00> : vector<2x32xf32>
    %5 = tpu.matmul %2, %4, %cst_5 {dimension_numbers = #tpu.dot_dimension_numbers<[1], [0], [0], [1], [0, 0, 1, 1], [], []>} : vector<2x32xf32>, vector<32x32xf32>, vector<2x32xf32> -> vector<2x32xf32>
    %6 = arith.addf %0, %5 : vector<2x32xf32>
    %c1 = arith.constant 1 : index
    %c0_6 = arith.constant 0 : index
    %c0_7 = arith.constant 0 : index
    %7 = vector.load %arg1[%c1, %c0_6, %c0_7] : memref<10x2x32xf32, #tpu.memory_space<vmem>>, vector<1x2x32xf32>
    %8 = vector.shape_cast %7 : vector<1x2x32xf32> to vector<2x32xf32>
    %c1_8 = arith.constant 1 : index
    %c0_9 = arith.constant 0 : index
    %c0_10 = arith.constant 0 : index
    %9 = vector.load %arg2[%c1_8, %c0_9, %c0_10] : memref<10x32x32xf32, #tpu.memory_space<vmem>>, vector<1x32x32xf32>
    %10 = vector.shape_cast %9 : vector<1x32x32xf32> to vector<32x32xf32>
    %cst_11 = arith.constant dense<0.000000e+00> : vector<2x32xf32>
    %11 = tpu.matmul %8, %10, %cst_11 {dimension_numbers = #tpu.dot_dimension_numbers<[1], [0], [0], [1], [0, 0, 1, 1], [], []>} : vector<2x32xf32>, vector<32x32xf32>, vector<2x32xf32> -> vector<2x32xf32>
    %12 = arith.addf %6, %11 : vector<2x32xf32>
    %c2 = arith.constant 2 : index
    %c0_12 = arith.constant 0 : index
    %c0_13 = arith.constant 0 : index
    %13 = vector.load %arg1[%c2, %c0_12, %c0_13] : memref<10x2x32xf32, #tpu.memory_space<vmem>>, vector<1x2x32xf32>
    %14 = vector.shape_cast %13 : vector<1x2x32xf32> to vector<2x32xf32>
    %c2_14 = arith.constant 2 : index
    %c0_15 = arith.constant 0 : index
    %c0_16 = arith.constant 0 : index
    %15 = vector.load %arg2[%c2_14, %c0_15, %c0_16] : memref<10x32x32xf32, #tpu.memory_space<vmem>>, vector<1x32x32xf32>
    %16 = vector.shape_cast %15 : vector<1x32x32xf32> to vector<32x32xf32>
    %cst_17 = arith.constant dense<0.000000e+00> : vector<2x32xf32>
    %17 = tpu.matmul %14, %16, %cst_17 {dimension_numbers = #tpu.dot_dimension_numbers<[1], [0], [0], [1], [0, 0, 1, 1], [], []>} : vector<2x32xf32>, vector<32x32xf32>, vector<2x32xf32> -> vector<2x32xf32>
    %18 = arith.addf %12, %17 : vector<2x32xf32>
    %c3 = arith.constant 3 : index
    %c0_18 = arith.constant 0 : index
    %c0_19 = arith.constant 0 : index
    %19 = vector.load %arg1[%c3, %c0_18, %c0_19] : memref<10x2x32xf32, #tpu.memory_space<vmem>>, vector<1x2x32xf32>
    %20 = vector.shape_cast %19 : vector<1x2x32xf32> to vector<2x32xf32>
    %c3_20 = arith.constant 3 : index
    %c0_21 = arith.constant 0 : index
    %c0_22 = arith.constant 0 : index
    %21 = vector.load %arg2[%c3_20, %c0_21, %c0_22] : memref<10x32x32xf32, #tpu.memory_space<vmem>>, vector<1x32x32xf32>
    %22 = vector.shape_cast %21 : vector<1x32x32xf32> to vector<32x32xf32>
    %cst_23 = arith.constant dense<0.000000e+00> : vector<2x32xf32>
    %23 = tpu.matmul %20, %22, %cst_23 {dimension_numbers = #tpu.dot_dimension_numbers<[1], [0], [0], [1], [0, 0, 1, 1], [], []>} : vector<2x32xf32>, vector<32x32xf32>, vector<2x32xf32> -> vector<2x32xf32>
    %24 = arith.addf %18, %23 : vector<2x32xf32>
    %c4 = arith.constant 4 : index
    %c0_24 = arith.constant 0 : index
    %c0_25 = arith.constant 0 : index
    %25 = vector.load %arg1[%c4, %c0_24, %c0_25] : memref<10x2x32xf32, #tpu.memory_space<vmem>>, vector<1x2x32xf32>
    %26 = vector.shape_cast %25 : vector<1x2x32xf32> to vector<2x32xf32>
    %c4_26 = arith.constant 4 : index
    %c0_27 = arith.constant 0 : index
    %c0_28 = arith.constant 0 : index
    %27 = vector.load %arg2[%c4_26, %c0_27, %c0_28] : memref<10x32x32xf32, #tpu.memory_space<vmem>>, vector<1x32x32xf32>
    %28 = vector.shape_cast %27 : vector<1x32x32xf32> to vector<32x32xf32>
    %cst_29 = arith.constant dense<0.000000e+00> : vector<2x32xf32>
    %29 = tpu.matmul %26, %28, %cst_29 {dimension_numbers = #tpu.dot_dimension_numbers<[1], [0], [0], [1], [0, 0, 1, 1], [], []>} : vector<2x32xf32>, vector<32x32xf32>, vector<2x32xf32> -> vector<2x32xf32>
    %30 = arith.addf %24, %29 : vector<2x32xf32>
    %c5 = arith.constant 5 : index
    %c0_30 = arith.constant 0 : index
    %c0_31 = arith.constant 0 : index
    %31 = vector.load %arg1[%c5, %c0_30, %c0_31] : memref<10x2x32xf32, #tpu.memory_space<vmem>>, vector<1x2x32xf32>
    %32 = vector.shape_cast %31 : vector<1x2x32xf32> to vector<2x32xf32>
    %c5_32 = arith.constant 5 : index
    %c0_33 = arith.constant 0 : index
    %c0_34 = arith.constant 0 : index
    %33 = vector.load %arg2[%c5_32, %c0_33, %c0_34] : memref<10x32x32xf32, #tpu.memory_space<vmem>>, vector<1x32x32xf32>
    %34 = vector.shape_cast %33 : vector<1x32x32xf32> to vector<32x32xf32>
    %cst_35 = arith.constant dense<0.000000e+00> : vector<2x32xf32>
    %35 = tpu.matmul %32, %34, %cst_35 {dimension_numbers = #tpu.dot_dimension_numbers<[1], [0], [0], [1], [0, 0, 1, 1], [], []>} : vector<2x32xf32>, vector<32x32xf32>, vector<2x32xf32> -> vector<2x32xf32>
    %36 = arith.addf %30, %35 : vector<2x32xf32>
    %c6 = arith.constant 6 : index
    %c0_36 = arith.constant 0 : index
    %c0_37 = arith.constant 0 : index
    %37 = vector.load %arg1[%c6, %c0_36, %c0_37] : memref<10x2x32xf32, #tpu.memory_space<vmem>>, vector<1x2x32xf32>
    %38 = vector.shape_cast %37 : vector<1x2x32xf32> to vector<2x32xf32>
    %c6_38 = arith.constant 6 : index
    %c0_39 = arith.constant 0 : index
    %c0_40 = arith.constant 0 : index
    %39 = vector.load %arg2[%c6_38, %c0_39, %c0_40] : memref<10x32x32xf32, #tpu.memory_space<vmem>>, vector<1x32x32xf32>
    %40 = vector.shape_cast %39 : vector<1x32x32xf32> to vector<32x32xf32>
    %cst_41 = arith.constant dense<0.000000e+00> : vector<2x32xf32>
    %41 = tpu.matmul %38, %40, %cst_41 {dimension_numbers = #tpu.dot_dimension_numbers<[1], [0], [0], [1], [0, 0, 1, 1], [], []>} : vector<2x32xf32>, vector<32x32xf32>, vector<2x32xf32> -> vector<2x32xf32>
    %42 = arith.addf %36, %41 : vector<2x32xf32>
    %c7 = arith.constant 7 : index
    %c0_42 = arith.constant 0 : index
    %c0_43 = arith.constant 0 : index
    %43 = vector.load %arg1[%c7, %c0_42, %c0_43] : memref<10x2x32xf32, #tpu.memory_space<vmem>>, vector<1x2x32xf32>
    %44 = vector.shape_cast %43 : vector<1x2x32xf32> to vector<2x32xf32>
    %c7_44 = arith.constant 7 : index
    %c0_45 = arith.constant 0 : index
    %c0_46 = arith.constant 0 : index
    %45 = vector.load %arg2[%c7_44, %c0_45, %c0_46] : memref<10x32x32xf32, #tpu.memory_space<vmem>>, vector<1x32x32xf32>
    %46 = vector.shape_cast %45 : vector<1x32x32xf32> to vector<32x32xf32>
    %cst_47 = arith.constant dense<0.000000e+00> : vector<2x32xf32>
    %47 = tpu.matmul %44, %46, %cst_47 {dimension_numbers = #tpu.dot_dimension_numbers<[1], [0], [0], [1], [0, 0, 1, 1], [], []>} : vector<2x32xf32>, vector<32x32xf32>, vector<2x32xf32> -> vector<2x32xf32>
    %48 = arith.addf %42, %47 : vector<2x32xf32>
    %c8 = arith.constant 8 : index
    %c0_48 = arith.constant 0 : index
    %c0_49 = arith.constant 0 : index
    %49 = vector.load %arg1[%c8, %c0_48, %c0_49] : memref<10x2x32xf32, #tpu.memory_space<vmem>>, vector<1x2x32xf32>
    %50 = vector.shape_cast %49 : vector<1x2x32xf32> to vector<2x32xf32>
    %c8_50 = arith.constant 8 : index
    %c0_51 = arith.constant 0 : index
    %c0_52 = arith.constant 0 : index
    %51 = vector.load %arg2[%c8_50, %c0_51, %c0_52] : memref<10x32x32xf32, #tpu.memory_space<vmem>>, vector<1x32x32xf32>
    %52 = vector.shape_cast %51 : vector<1x32x32xf32> to vector<32x32xf32>
    %cst_53 = arith.constant dense<0.000000e+00> : vector<2x32xf32>
    %53 = tpu.matmul %50, %52, %cst_53 {dimension_numbers = #tpu.dot_dimension_numbers<[1], [0], [0], [1], [0, 0, 1, 1], [], []>} : vector<2x32xf32>, vector<32x32xf32>, vector<2x32xf32> -> vector<2x32xf32>
    %54 = arith.addf %48, %53 : vector<2x32xf32>
    %c9 = arith.constant 9 : index
    %c0_54 = arith.constant 0 : index
    %c0_55 = arith.constant 0 : index
    %55 = vector.load %arg1[%c9, %c0_54, %c0_55] : memref<10x2x32xf32, #tpu.memory_space<vmem>>, vector<1x2x32xf32>
    %56 = vector.shape_cast %55 : vector<1x2x32xf32> to vector<2x32xf32>
    %c9_56 = arith.constant 9 : index
    %c0_57 = arith.constant 0 : index
    %c0_58 = arith.constant 0 : index
    %57 = vector.load %arg2[%c9_56, %c0_57, %c0_58] : memref<10x32x32xf32, #tpu.memory_space<vmem>>, vector<1x32x32xf32>
    %58 = vector.shape_cast %57 : vector<1x32x32xf32> to vector<32x32xf32>
    %cst_59 = arith.constant dense<0.000000e+00> : vector<2x32xf32>
    %59 = tpu.matmul %56, %58, %cst_59 {dimension_numbers = #tpu.dot_dimension_numbers<[1], [0], [0], [1], [0, 0, 1, 1], [], []>} : vector<2x32xf32>, vector<32x32xf32>, vector<2x32xf32> -> vector<2x32xf32>
    %60 = arith.addf %54, %59 : vector<2x32xf32>
    %c0_60 = arith.constant 0 : index
    %c0_61 = arith.constant 0 : index
    %61 = vector.load %arg3[%c0_60, %c0_61] : memref<1x32xf32, #tpu.memory_space<vmem>>, vector<1x32xf32>
    %62 = vector.broadcast %61 : vector<1x32xf32> to vector<2x32xf32>
    %63 = arith.addf %60, %62 : vector<2x32xf32>
    %cst_62 = arith.constant 0.000000e+00 : f32
    %64 = vector.broadcast %cst_62 : f32 to vector<2x32xf32>
    %65 = arith.maximumf %63, %64 : vector<2x32xf32>
    %c0_63 = arith.constant 0 : index
    %c0_64 = arith.constant 0 : index
    %66 = vector.load %arg4[%c0_63, %c0_64] : memref<32x2xf32, #tpu.memory_space<vmem>>, vector<32x2xf32>
    %cst_65 = arith.constant dense<0.000000e+00> : vector<2x2xf32>
    %67 = tpu.matmul %65, %66, %cst_65 {dimension_numbers = #tpu.dot_dimension_numbers<[1], [0], [0], [1], [0, 0, 1, 1], [], []>} : vector<2x32xf32>, vector<32x2xf32>, vector<2x2xf32> -> vector<2x2xf32>
    %c0_66 = arith.constant 0 : index
    %c0_67 = arith.constant 0 : index
    %68 = vector.load %arg5[%c0_66, %c0_67] : memref<1x2xf32, #tpu.memory_space<vmem>>, vector<1x2xf32>
    %69 = vector.broadcast %68 : vector<1x2xf32> to vector<2x2xf32>
    %70 = arith.addf %67, %69 : vector<2x2xf32>
    %c0_68 = arith.constant 0 : index
    %c0_69 = arith.constant 0 : index
    %71 = vector.load %arg6[%c0_68, %c0_69] : memref<2x2xf32, #tpu.memory_space<vmem>>, vector<2x2xf32>
    tpu.vector_store %arg6[%c0_68, %c0_69], %70 {strides = array<i32>} : memref<2x2xf32, #tpu.memory_space<vmem>>, vector<2x2xf32>,
    return
  }
  func.func @transform_0(%arg0: i32) -> (i32, i32, i32) {
    %c0_i32 = arith.constant 0 : i32
    %c0_i32_0 = arith.constant 0 : i32
    %c0_i32_1 = arith.constant 0 : i32
    return %c0_i32, %arg0, %c0_i32_0 : i32, i32, i32
  }
  func.func @transform_1(%arg0: i32) -> (i32, i32, i32) {
    %c0_i32 = arith.constant 0 : i32
    %c0_i32_0 = arith.constant 0 : i32
    %c0_i32_1 = arith.constant 0 : i32
    %c0_i32_2 = arith.constant 0 : i32
    return %c0_i32, %c0_i32_0, %c0_i32_1 : i32, i32, i32
  }
  func.func @transform_2(%arg0: i32) -> (i32, i32) {
    %c0_i32 = arith.constant 0 : i32
    %c0_i32_0 = arith.constant 0 : i32
    %c0_i32_1 = arith.constant 0 : i32
    return %c0_i32, %c0_i32_0 : i32, i32
  }
  func.func @transform_3(%arg0: i32) -> (i32, i32) {
    %c0_i32 = arith.constant 0 : i32
    %c0_i32_0 = arith.constant 0 : i32
    %c0_i32_1 = arith.constant 0 : i32
    return %c0_i32, %c0_i32_0 : i32, i32
  }
  func.func @transform_4(%arg0: i32) -> (i32, i32) {
    %c0_i32 = arith.constant 0 : i32
    %c0_i32_0 = arith.constant 0 : i32
    %c0_i32_1 = arith.constant 0 : i32
    return %c0_i32, %c0_i32_0 : i32, i32
  }
  func.func @transform_5(%arg0: i32) -> (i32, i32) {
    %c0_i32 = arith.constant 0 : i32
    %c0_i32_0 = arith.constant 0 : i32
    return %arg0, %c0_i32 : i32, i32
  }
}

</mosaic_0001>

<bundles_post_ra>
// kernel: rlnet_forward.1
= control target key start
LH: loop header
LB: loop body
LE: loop exit
PB: predicated region body
PF: predicated region fallthrough
CT: control target
= control target key end

     0   :  { %v1196_v2 = vmov 0.0   ;;  %vm33_vm0 = vcmask 261120   ;;  %vm1197_vm1 = vmmov 0   ;;  %s1477_s0 = inlined_call_operand.vmem [shape: f32[10,2,32], index: 0, kind: input, shape index: {}]   ;;  %s1478_s1 = inlined_call_operand.vmem [shape: f32[10,32,32], index: 1, kind: input, shape index: {}]   ;;  %s1479_s2 = inlined_call_operand.vmem [shape: f32[1,32], index: 2, kind: input, shape index: {}]   ;;  %s1480_s3 = inlined_call_operand.vmem [shape: f32[32,2], index: 3, kind: input, shape index: {}]   ;;  %s1481_s4 = inlined_call_operand.vmem [shape: f32[1,2], index: 4, kind: input, shape index: {}]   ;;  %s1482_s5 = inlined_call_operand.hbm [shape: f32[2,2], index: 5, kind: output, shape index: {}]  }
   0x1   :  { %v941_v0 = vld [vmem:[%s1478_s1 + $0x38] sm:$0xff]  ;;  %1050 = vmatprep.subr.mxu0 %v1196_v2  ;;  %1061 = vmatprep.subr.mxu1 %v1196_v2  ;;  %v940_v3 = vld [vmem:[%s1478_s1 + $0x30] sm:$0xff]  ;;  %v939_v5 = vld [vmem:[%s1478_s1 + $0x28] sm:$0xff] }
   0x2   :  { %v25_v1 = vld [vmem:[%s1478_s1 + $0x18] sm:$0xff]  ;;  %v24_v4 = vld [vmem:[%s1478_s1 + $0x10] sm:$0xff]  ;;  %1051 = vmatpush3.msra.mxu0 %v941_v0  ;;  %v23_v6 = vld [vmem:[%s1478_s1 + $0x8] sm:$0xff]  ;;  %1058 = vmatprep.mubr.msk.f32.mxu0 %vm1197_vm1, %v1196_v2 }
   0x3   :  { %1062 = vmatpush3.msra.mxu1 %v25_v1  ;;  %1052 = vmatprep.subr.mxu0 %v1196_v2  ;;  %v938_v7 = vld [vmem:[%s1478_s1 + $0x20] sm:$0xff]  ;;  %v948_v11 = vld [vmem:[%s1478_s1 + $0x58] sm:$0xff]  ;;  %v947_v13 = vld [vmem:[%s1478_s1 + $0x50] sm:$0xff] }
   0x4   :  { %1063 = vmatprep.subr.mxu1 %v1196_v2  ;;  %1053 = vmatpush3.msra.mxu0 %v940_v3  ;;  %v22_v8 = vld [vmem:[%s1478_s1] sm:$0xff]  ;;  %v954_v12 = vld [vmem:[%s1478_s1 + $0x78] sm:$0xff]  ;;  %v953_v14 = vld [vmem:[%s1478_s1 + $0x70] sm:$0xff] }
   0x5   :  { %1064 = vmatpush3.msra.mxu1 %v24_v4  ;;  %1054 = vmatprep.subr.mxu0 %v1196_v2  ;;  %v937_v9 = vld [vmem:[%s1477_s0 + $0x2] sm:$0x3]  ;;  %v21_v10 = vld [vmem:[%s1477_s0] sm:$0x3]  ;;  %v946_v15 = vld [vmem:[%s1478_s1 + $0x48] sm:$0xff] }
   0x6   :  { %1065 = vmatprep.subr.mxu1 %v1196_v2  ;;  %1055 = vmatpush3.msra.mxu0 %v939_v5  ;;  %v952_v16 = vld [vmem:[%s1478_s1 + $0x68] sm:$0xff]  ;;  %v945_v17 = vld [vmem:[%s1478_s1 + $0x40] sm:$0xff] }
   0x7   :  { %1066 = vmatpush3.msra.mxu1 %v23_v6  ;;  %1056 = vmatprep.subr.mxu0 %v1196_v2  ;;  %v951_v18 = vld [vmem:[%s1478_s1 + $0x60] sm:$0xff] }
   0x8   :  { %1067 = vmatprep.subr.mxu1 %v1196_v2  ;;  %1057 = vmatpush3.msra.mxu0 %v938_v7  ;;  %v944_v19 = vld [vmem:[%s1477_s0 + $0x4] sm:$0x3] }
   0x9   :  { %1068 = vmatpush3.msra.mxu1 %v22_v8  ;;  %1059 = vmatmul.mubr.msk.f32.vlgmr.msra.gmra.mxu0 %vm33_vm0, %v937_v9 }
   0xa   :  { %1069 = vmatprep.mubr.msk.f32.mxu1 %vm1197_vm1, %v1196_v2  ;;  %1072 = vmatprep.subr.mxu0 %v1196_v2 }
   0xb   :  { %1083 = vmatprep.subr.mxu1 %v1196_v2  ;;  %1070 = vmatmul.mubr.msk.f32.vlgmr.msra.gmra.mxu1 %vm33_vm0, %v21_v10 }
   0xc   :  { %1073 = vmatpush3.msra.mxu0 %v948_v11  ;;  %1084 = vmatpush3.msra.mxu1 %v954_v12 }
   0xd   :  { %1074 = vmatprep.subr.mxu0 %v1196_v2  ;;  %1085 = vmatprep.subr.mxu1 %v1196_v2 }
   0xe   :  { %1075 = vmatpush3.msra.mxu0 %v947_v13  ;;  %1086 = vmatpush3.msra.mxu1 %v953_v14 }
   0xf   :  { %1076 = vmatprep.subr.mxu0 %v1196_v2  ;;  %1087 = vmatprep.subr.mxu1 %v1196_v2 }
  0x10   :  { %1077 = vmatpush3.msra.mxu0 %v946_v15  ;;  %1088 = vmatpush3.msra.mxu1 %v952_v16 }
  0x11   :  { %10 = vsyncpa [#allocation3], 0  ;;  %1078 = vmatprep.subr.mxu0 %v1196_v2  ;;  %1089 = vmatprep.subr.mxu1 %v1196_v2  ;;  %v950_v20 = vld [vmem:[%s1477_s0 + $0x6] sm:$0x3]  ;;  %v960_v21 = vld [vmem:[%s1478_s1 + $0x98] sm:$0xff]  ;;  %s1198_s27 = smov [#allocation2]  }
  0x12   :  { %1079 = vmatpush3.msra.mxu0 %v945_v17  ;;  %1080 = vmatprep.mubr.msk.f32.mxu0 %vm1197_vm1, %v1196_v2  ;;  %v966_v22 = vld [vmem:[%s1478_s1 + $0xb8] sm:$0xff]  ;;  %v959_v23 = vld [vmem:[%s1478_s1 + $0x90] sm:$0xff]  ;;  %v958_v25 = vld [vmem:[%s1478_s1 + $0x88] sm:$0xff]  ;;  %s929_s28 = sshll.u32 %s1198_s27, 4  ;;  %vm921_vm2 = vcmask 9216   ;;  %s930_s28 = int_to_ptr.vmem [resolvable:$true] %s929_s28 }
  0x13   :  { %1090 = vmatpush3.msra.mxu1 %v951_v18  ;;  %1081 = vmatmul.mubr.msk.f32.vlgmr.msra.gmra.mxu0 %vm33_vm0, %v944_v19  ;;  %v965_v24 = vld [vmem:[%s1478_s1 + $0xb0] sm:$0xff]  ;;  %v964_v26 = vld [vmem:[%s1478_s1 + $0xa8] sm:$0xff]  ;;  %v957_v27 = vld [vmem:[%s1478_s1 + $0x80] sm:$0xff]  ;;  %p1179_p1 = scmp.lt.s32.totalorder %s930_s28, %s930_s28 }
  0x14   :  { %1091 = vmatprep.mubr.msk.f32.mxu1 %vm1197_vm1, %v1196_v2  ;;  %1094 = vmatprep.subr.mxu0 %v1196_v2  ;;  %v963_v28 = vld [vmem:[%s1478_s1 + $0xa0] sm:$0xff]  ;;  %v956_v29 = vld [vmem:[%s1477_s0 + $0x8] sm:$0x3]  ;;  %v962_v30 = vld [vmem:[%s1477_s0 + $0xa] sm:$0x3] }
  0x15   :  { %1105 = vmatprep.subr.mxu1 %v1196_v2  ;;  %1092 = vmatmul.mubr.msk.f32.vlgmr.msra.gmra.mxu1 %vm33_vm0, %v950_v20  ;;  %v972_v31 = vld [vmem:[%s1478_s1 + $0xd8] sm:$0xff]  ;;  %v971_v33 = vld [vmem:[%s1478_s1 + $0xd0] sm:$0xff]  ;;  %v970_v35 = vld [vmem:[%s1478_s1 + $0xc8] sm:$0xff] }
  0x16   :  { %1095 = vmatpush3.msra.mxu0 %v960_v21  ;;  %1106 = vmatpush3.msra.mxu1 %v966_v22  ;;  %v978_v32 = vld [vmem:[%s1478_s1 + $0xf8] sm:$0xff]  ;;  %v977_v34 = vld [vmem:[%s1478_s1 + $0xf0] sm:$0xff]  ;;  %v976_v36 = vld [vmem:[%s1478_s1 + $0xe8] sm:$0xff] }
  0x17   :  { %1096 = vmatprep.subr.mxu0 %v1196_v2  ;;  %1107 = vmatprep.subr.mxu1 %v1196_v2  ;;  %v969_v37 = vld [vmem:[%s1478_s1 + $0xc0] sm:$0xff]  ;;  %v968_v39 = vld [vmem:[%s1477_s0 + $0xc] sm:$0x3]  ;;  %v974_v40 = vld [vmem:[%s1477_s0 + $0xe] sm:$0x3] }
  0x18   :  { %1097 = vmatpush3.msra.mxu0 %v959_v23  ;;  %1108 = vmatpush3.msra.mxu1 %v965_v24  ;;  %v975_v38 = vld [vmem:[%s1478_s1 + $0xe0] sm:$0xff]  ;;  %v984_v41 = vld [vmem:[%s1478_s1 + $0x118] sm:$0xff]  ;;  %v983_v43 = vld [vmem:[%s1478_s1 + $0x110] sm:$0xff] }
  0x19   :  { %1098 = vmatprep.subr.mxu0 %v1196_v2  ;;  %1109 = vmatprep.subr.mxu1 %v1196_v2  ;;  %v990_v42 = vld [vmem:[%s1478_s1 + $0x138] sm:$0xff]  ;;  %v989_v44 = vld [vmem:[%s1478_s1 + $0x130] sm:$0xff]  ;;  %v982_v45 = vld [vmem:[%s1478_s1 + $0x108] sm:$0xff] }
  0x1a   :  { %1099 = vmatpush3.msra.mxu0 %v958_v25  ;;  %1110 = vmatpush3.msra.mxu1 %v964_v26  ;;  %v988_v46 = vld [vmem:[%s1478_s1 + $0x128] sm:$0xff]  ;;  %v981_v47 = vld [vmem:[%s1478_s1 + $0x100] sm:$0xff]  ;;  %v980_v49 = vld [vmem:[%s1477_s0 + $0x10] sm:$0x3] }
  0x1b   :  { %1100 = vmatprep.subr.mxu0 %v1196_v2  ;;  %1111 = vmatprep.subr.mxu1 %v1196_v2  ;;  %v987_v48 = vld [vmem:[%s1478_s1 + $0x120] sm:$0xff]  ;;  %v986_v50 = vld [vmem:[%s1477_s0 + $0x12] sm:$0x3]  ;;  %v840_v51 = vld [vmem:[%s1480_s3 + $0x18] sm:$0xff] }
  0x1c   :  { %1101 = vmatpush3.msra.mxu0 %v957_v27  ;;  %1102 = vmatprep.mubr.msk.f32.mxu0 %vm1197_vm1, %v1196_v2  ;;  %v839_v52 = vld [vmem:[%s1480_s3 + $0x10] sm:$0xff]  ;;  %v838_v53 = vld [vmem:[%s1480_s3 + $0x8] sm:$0xff]  ;;  %v837_v54 = vld [vmem:[%s1480_s3] sm:$0xff] }
  0x1d   :  { %1112 = vmatpush3.msra.mxu1 %v963_v28  ;;  %1103 = vmatmul.mubr.msk.f32.vlgmr.msra.gmra.mxu0 %vm33_vm0, %v956_v29  ;;  %v992_v17 = vld [vmem:[%s1479_s2] ss:$0 sm:$0xff]  ;;  %s1174_s2 = scalar_lea.vmem %s930_s28, 32 }
  0x1e   :  { %1113 = vmatprep.mubr.msk.f32.mxu1 %vm1197_vm1, %v1196_v2  ;;  %1116 = vmatprep.subr.mxu0 %v1196_v2  ;;  %v993_v23 = vld [vmem:[%s1481_s4] ss:$0 sm:$0xff]  ;;  %p1175_p0 = scmp.ne.s32.totalorder %s930_s28, %s1174_s2  ;;  %p1180_p2 = scmp.lt.s32.totalorder %s1174_s2, %s1174_s2 }
  0x1f   :  { %1127 = vmatprep.subr.mxu1 %v1196_v2  ;;  %1114 = vmatmul.mubr.msk.f32.vlgmr.msra.gmra.mxu1 %vm33_vm0, %v962_v30 }
  0x20   :  { %1117 = vmatpush3.msra.mxu0 %v972_v31  ;;  %1128 = vmatpush3.msra.mxu1 %v978_v32  ;;  %p1181_p3 = por %p1180_p2, %p1179_p1 }
  0x21   :  { %1118 = vmatprep.subr.mxu0 %v1196_v2  ;;  %1129 = vmatprep.subr.mxu1 %v1196_v2 }
  0x22   :  { %1119 = vmatpush3.msra.mxu0 %v971_v33  ;;  %1130 = vmatpush3.msra.mxu1 %v977_v34  ;;  %p1182_p4 = pnand %p1181_p3, %p1175_p0 }
  0x23   :  { %1120 = vmatprep.subr.mxu0 %v1196_v2  ;;  %1131 = vmatprep.subr.mxu1 %v1196_v2 }
  0x24   :  { %1121 = vmatpush3.msra.mxu0 %v970_v35  ;;  %1132 = vmatpush3.msra.mxu1 %v976_v36 }
  0x25   :  { %1122 = vmatprep.subr.mxu0 %v1196_v2  ;;  %1133 = vmatprep.subr.mxu1 %v1196_v2 }
  0x26   :  { %1123 = vmatpush3.msra.mxu0 %v969_v37  ;;  %1124 = vmatprep.mubr.msk.f32.mxu0 %vm1197_vm1, %v1196_v2 }
  0x27   :  { %1134 = vmatpush3.msra.mxu1 %v975_v38  ;;  %1125 = vmatmul.mubr.msk.f32.vlgmr.msra.gmra.mxu0 %vm33_vm0, %v968_v39 }
  0x28   :  { %1135 = vmatprep.mubr.msk.f32.mxu1 %vm1197_vm1, %v1196_v2  ;;  %1138 = vmatprep.subr.mxu0 %v1196_v2 }
  0x29   :  { %1149 = vmatprep.subr.mxu1 %v1196_v2  ;;  %1136 = vmatmul.mubr.msk.f32.vlgmr.msra.gmra.mxu1 %vm33_vm0, %v974_v40 }
  0x2a   :  { %1139 = vmatpush3.msra.mxu0 %v984_v41  ;;  %1150 = vmatpush3.msra.mxu1 %v990_v42 }
  0x2b   :  { %1140 = vmatprep.subr.mxu0 %v1196_v2  ;;  %1151 = vmatprep.subr.mxu1 %v1196_v2 }
  0x2c   :  { %1141 = vmatpush3.msra.mxu0 %v983_v43  ;;  %1152 = vmatpush3.msra.mxu1 %v989_v44 }
  0x2d   :  { %1142 = vmatprep.subr.mxu0 %v1196_v2  ;;  %1153 = vmatprep.subr.mxu1 %v1196_v2 }
  0x2e   :  { %1143 = vmatpush3.msra.mxu0 %v982_v45  ;;  %1154 = vmatpush3.msra.mxu1 %v988_v46 }
  0x2f   :  { %1144 = vmatprep.subr.mxu0 %v1196_v2  ;;  %1155 = vmatprep.subr.mxu1 %v1196_v2 }
  0x30   :  { %1145 = vmatpush3.msra.mxu0 %v981_v47  ;;  %1146 = vmatprep.mubr.msk.f32.mxu0 %vm1197_vm1, %v1196_v2 }
  0x31   :  { %1156 = vmatpush3.msra.mxu1 %v987_v48  ;;  %1157 = vmatprep.mubr.msk.f32.mxu1 %vm1197_vm1, %v1196_v2 }
  0x32   :  { %1147 = vmatmul.mubr.msk.f32.vlgmr.msra.gmra.mxu0 %vm33_vm0, %v980_v49  ;;  %1158 = vmatmul.mubr.msk.f32.vlgmr.msra.gmra.mxu1 %vm33_vm0, %v986_v50 }
  0x33   :  { %1160 = vmatprep.subr.mxu0 %v1196_v2  ;;  %1168 = vmatprep.mubr.msk.f32.mxu0 %vm1197_vm1, %v1196_v2 }
  0x34   :  { %1161 = vmatpush3.msra.mxu0 %v840_v51 }
  0x35   :  { %1162 = vmatprep.subr.mxu0 %v1196_v2 }
  0x36   :  { %1163 = vmatpush3.msra.mxu0 %v839_v52 }
  0x37   :  { %1164 = vmatprep.subr.mxu0 %v1196_v2 }
  0x38   :  { %1165 = vmatpush3.msra.mxu0 %v838_v53 }
  0x39   :  { %1166 = vmatprep.subr.mxu0 %v1196_v2 }
  0x3a   :  { %1167 = vmatpush3.msra.mxu0 %v837_v54 }
  0xc9   :  { %v103_v55 = vpop.f32.mrf.mxu0 }
  0xcb   :  { %v176_v56 = vpop.f32.mrf.mxu1  ;;  %v1060_v57 = vpop.f32.mrf.mxu0 }
  0xcc   :  { %v177_v0 = vadd.f32 %v176_v56, %v103_v55 }
  0xcd   :  { %v1071_v58 = vpop.f32.mrf.mxu1 }
  0xd3   :  { %v256_v59 = vpop.f32.mrf.mxu0 }
  0xd4   :  { %v260_v4 = vadd.f32 %v256_v59, %v177_v0 }
  0xd5   :  { %v337_v60 = vpop.f32.mrf.mxu1  ;;  %v1082_v61 = vpop.f32.mrf.mxu0 }
  0xd6   :  { %v341_v2 = vadd.f32 %v337_v60, %v260_v4 }
  0xd7   :  { %v1093_v62 = vpop.f32.mrf.mxu1 }
  0xdd   :  { %v418_v63 = vpop.f32.mrf.mxu0 }
  0xde   :  { %v422_v6 = vadd.f32 %v418_v63, %v341_v2 }
  0xdf   :  { %v499_v1 = vpop.f32.mrf.mxu1  ;;  %v1104_v3 = vpop.f32.mrf.mxu0 }
  0xe0   :  { %v503_v10 = vadd.f32 %v499_v1, %v422_v6 }
  0xe1   :  { %v1115_v5 = vpop.f32.mrf.mxu1 }
  0xe7   :  { %v580_v7 = vpop.f32.mrf.mxu0 }
  0xe8   :  { %v584_v12 = vadd.f32 %v580_v7, %v503_v10 }
  0xe9   :  { %v661_v8 = vpop.f32.mrf.mxu1  ;;  %v1126_v9 = vpop.f32.mrf.mxu0 }
  0xea   :  { %v665_v13 = vadd.f32 %v661_v8, %v584_v12 }
  0xeb   :  { %v1137_v11 = vpop.f32.mrf.mxu1 }
  0xf2   :  { %v742_v14 = vpop.f32.mrf.mxu0  ;;  %v823_v15 = vpop.f32.mrf.mxu1 }
  0xf3   :  { %v746_v16 = vadd.f32 %v742_v14, %v665_v13 }
  0xf4   :  { %v1148_v18 = vpop.f32.mrf.mxu0  ;;  %v1159_v19 = vpop.f32.mrf.mxu1 }
  0xf5   :  { %v827_v20 = vadd.f32 %v823_v15, %v746_v16 }
  0xf7   :  { %v835_v21 = vadd.f32 %v992_v17, %v827_v20 }
  0xf9   :  { %v836_v22 = vmax.f32 %v835_v21, 0.0 }
  0xfb   :  { %1169 = vmatmul.mubr.msk.f32.vlgmr.msra.gmra.mxu0 %vm33_vm0, %v836_v22 }
 0x1bb   :  { %v917_v24 = vpop.f32.mrf.mxu0 }
 0x1bc   :  { %v918_v25 = vadd.f32 %v993_v23, %v917_v24 }
 0x1bd   :  { %v1170_v26 = vpop.f32.mrf.mxu0 }
 0x1be   :  { %922 = vst.msk [vmem:[#allocation2] sm:$0x3] %vm921_vm2, %v918_v25 }
 0x1bf   :  { %1185 = shalt.err (!%p1182_p4)
}
 0x1c0   :  { %932 = dma.vmem_to_hbm [thread:$0]  %s930_s28, 32, %s1482_s5, [#allocation3]  }
 0x1c1   :  { %1194 = dma.done.wait [#allocation3], 32  }
 0x1c2   :  { %1195 = vsyncadd [#allocation3], 4294967264 }
 0x1c3   :  { %936 = vsyncpa [#allocation3], 1 }

</bundles_post_ra>
